<compile_context>
chip_gen: v7x
topology: tpu7x:2x2x1
jax: 0.10.0
libtpu: 0.0.40
codegen_flags: <defaults>
</compile_context>

<pallas_src>
import functools

import jax
import jax.numpy as jnp
from jax.experimental import pallas as pl
from jax.experimental.pallas import tpu as pltpu

LANE = 128
SUBLANE = 8


def _round_up(n: int, m: int) -> int:
    return ((n + m - 1) // m) * m


def _vmem_capacity_bytes() -> int:
    try:
        return int(pltpu.get_tpu_info().vmem_capacity_bytes)
    except Exception:
        return 64 << 20  # conservative fallback (v7x per-TC size)


_VMEM_CAP = _vmem_capacity_bytes()
# Leave headroom for compiler scratch: clamp declared limit to ~85% of physical.
_VMEM_CLAMP = max(16 << 20, int(_VMEM_CAP * 0.85))
# Larger batch tiles are worthwhile when there is VMEM to spare (v5e/v6e: 128 MiB).
_BIG_TILE = 512 if _VMEM_CAP >= (96 << 20) else 256


# ----------------------------------------------------------------------------
# Kernel
# ----------------------------------------------------------------------------
def mlp_kernel(x_ref, w1_ref, b1_ref, w2_ref, b2_ref, w3_ref, b3_ref, o_ref):
    # x tile arrives as f32; cast to bf16 on the VPU (hidden under MXU work).
    x = x_ref[...].astype(jnp.bfloat16)                                   # [tb, in_p]
    h1 = jnp.dot(x, w1_ref[...], preferred_element_type=jnp.float32)      # [tb, hid_p] f32
    h1 = jnp.maximum(h1 + b1_ref[...], 0.0).astype(jnp.bfloat16)
    h2 = jnp.dot(h1, w2_ref[...], preferred_element_type=jnp.float32)     # [tb, hid_p] f32
    h2 = jnp.maximum(h2 + b2_ref[...], 0.0)                               # keep f32 for fc3
    out = jnp.dot(h2, w3_ref[...], preferred_element_type=jnp.float32)    # f32 x f32 matmul
    o_ref[...] = out + b3_ref[...]


# ----------------------------------------------------------------------------
# One-time parameter preparation (pad to 128 lanes, cast fc1/fc2 weights bf16)
# ----------------------------------------------------------------------------
def prepare_mlp_params(params):
    """Pad feature dims to multiples of 128 and cast fc1/fc2 weights to bf16.

    Call once (e.g. at model load); the returned tuple is reused by every
    `mlp_forward` call, so no per-call weight padding/casting HBM traffic.
    Zero padding preserves the math exactly.
    """
    w1, b1, w2, b2, w3, b3 = params
    in_size, hidden = w1.shape
    out_size = w3.shape[1]

    in_p = _round_up(in_size, LANE)
    hid_p = _round_up(hidden, LANE)
    out_p = _round_up(out_size, LANE)

    bf16, f32 = jnp.bfloat16, jnp.float32
    w1p = jnp.zeros((in_p, hid_p), bf16).at[:in_size, :hidden].set(w1.astype(bf16))
    b1p = jnp.zeros((1, hid_p), f32).at[:, :hidden].set(b1.astype(f32))
    w2p = jnp.zeros((hid_p, hid_p), bf16).at[:hidden, :hidden].set(w2.astype(bf16))
    b2p = jnp.zeros((1, hid_p), f32).at[:, :hidden].set(b2.astype(f32))
    # fc3 kept in f32 for closer parity with the f32 PyTorch module.
    w3p = jnp.zeros((hid_p, out_p), f32).at[:hidden, :out_size].set(w3.astype(f32))
    b3p = jnp.zeros((1, out_p), f32).at[:, :out_size].set(b3.astype(f32))
    return (w1p, b1p, w2p, b2p, w3p, b3p)


# ----------------------------------------------------------------------------
# Forward
# ----------------------------------------------------------------------------
@functools.partial(jax.jit, static_argnames=("out_size", "batch_tile"))
def mlp_forward(x, padded_params, *, out_size, batch_tile=None):
    """Fused MLP forward. x: [B, input_size] f32 -> [B, output_size] f32."""
    w1p, b1p, w2p, b2p, w3p, b3p = padded_params
    B, in_size = x.shape
    in_p, hid_p = w1p.shape
    out_p = w3p.shape[1]

    # --- batch tiling: one tile if it fits, else 128-aligned big tiles -------
    if batch_tile is not None:
        tb = _round_up(max(batch_tile, SUBLANE), SUBLANE)
    elif B <= _BIG_TILE:
        tb = _round_up(B, SUBLANE)          # single grid step, no dead work
    else:
        tb = _BIG_TILE                      # 256/512: full-height MXU passes
    B_pad = _round_up(B, tb)
    grid = (B_pad // tb,)

    # --- pad x only when required (stays f32; bf16 cast happens in-kernel) ---
    if (B_pad != B) or (in_p != in_size):
        xp = jnp.zeros((B_pad, in_p), x.dtype).at[:B, :in_size].set(x)
    else:
        xp = x

    # --- VMEM budget: single-buffered weights, double-buffered x/out tiles ---
    w_bytes = in_p * hid_p * 2 + hid_p * hid_p * 2 + hid_p * out_p * 4
    b_bytes = (2 * hid_p + out_p) * 4
    io_bytes = tb * (in_p + out_p) * 4                       # f32 x tile + f32 out tile
    act_bytes = tb * (in_p * 2 + hid_p * (4 + 2 + 4))        # bf16 x, h1 f32+bf16, h2 f32
    vmem_limit = w_bytes + b_bytes + 2 * io_bytes + act_bytes + (4 << 20)
    vmem_limit = int(min(max(vmem_limit, 16 << 20), _VMEM_CLAMP))

    resident = pl.Buffered(1)   # constant index_map -> no benefit from double-buffering

    out_padded = pl.pallas_call(
        mlp_kernel,
        out_shape=jax.ShapeDtypeStruct((B_pad, out_p), jnp.float32),
        grid_spec=pl.GridSpec(
            grid=grid,
            in_specs=[
                pl.BlockSpec((tb, in_p), lambda i: (i, 0)),                               # x (streamed)
                pl.BlockSpec((in_p, hid_p), lambda i: (0, 0), pipeline_mode=resident),    # w1
                pl.BlockSpec((1, hid_p), lambda i: (0, 0), pipeline_mode=resident),       # b1
                pl.BlockSpec((hid_p, hid_p), lambda i: (0, 0), pipeline_mode=resident),   # w2
                pl.BlockSpec((1, hid_p), lambda i: (0, 0), pipeline_mode=resident),       # b2
                pl.BlockSpec((hid_p, out_p), lambda i: (0, 0), pipeline_mode=resident),   # w3
                pl.BlockSpec((1, out_p), lambda i: (0, 0), pipeline_mode=resident),       # b3
            ],
            out_specs=pl.BlockSpec((tb, out_p), lambda i: (i, 0)),                        # lane-dense
        ),
        compiler_params=pltpu.CompilerParams(
            dimension_semantics=("parallel",),
            vmem_limit_bytes=vmem_limit,
        ),
    )(xp, w1p, b1p, w2p, b2p, w3p, b3p)

    # Strip batch and lane padding.
    return out_padded[:B, :out_size]


# ----------------------------------------------------------------------------
# Init + reference (mirrors the kernel's precision: bf16 fc1/fc2, f32 fc3)
# ----------------------------------------------------------------------------
def init_mlp_params(key, input_size, hidden_size, output_size=2):
    """Deterministic init matching nn.Linear shapes (weights as [in, out])."""
    def linear_init(k, fan_in, fan_out):
        kw, kb = jax.random.split(k)
        bound = 1.0 / jnp.sqrt(jnp.float32(fan_in))
        w = jax.random.uniform(kw, (fan_in, fan_out), jnp.float32, -bound, bound)
        b = jax.random.uniform(kb, (1, fan_out), jnp.float32, -bound, bound)
        return w, b

    k1, k2, k3 = jax.random.split(key, 3)
    w1, b1 = linear_init(k1, input_size, hidden_size)
    w2, b2 = linear_init(k2, hidden_size, hidden_size)
    w3, b3 = linear_init(k3, hidden_size, output_size)
    return (w1, b1, w2, b2, w3, b3)


def mlp_reference(x, params):
    w1, b1, w2, b2, w3, b3 = params
    bf16, f32 = jnp.bfloat16, jnp.float32
    up = lambda a: a.astype(bf16).astype(f32)
    h1 = jnp.maximum(up(x) @ up(w1) + b1, 0.0)
    h2 = jnp.maximum(up(h1) @ up(w2) + b2, 0.0)
    return h2 @ w3 + b3


if __name__ == "__main__":
    key = jax.random.PRNGKey(0)
    k_param, k_x = jax.random.split(key)

    batch = 8
    input_size = 16
    hidden_size = 32
    output_size = 2

    params = init_mlp_params(k_param, input_size, hidden_size, output_size)
    x = jax.random.normal(k_x, (batch, input_size), jnp.float32)

    padded_params = prepare_mlp_params(params)          # one-time pad/cast
    out = mlp_forward(x, padded_params, out_size=output_size)
    out = jax.block_until_ready(out)

    ref = mlp_reference(x, params)
    assert out.shape == (batch, output_size)
    assert jnp.allclose(out, ref, atol=1e-2, rtol=1e-2), float(jnp.max(jnp.abs(out - ref)))

    print("KERNEL_OK")
</pallas_src>

<mosaic_0001>
module attributes {stable_mosaic.version = 11 : i64} {
  func.func @mlp_kernel(%arg0: i32, %arg1: memref<8x128xf32, #tpu.memory_space<vmem>>, %arg2: memref<128x128xbf16, #tpu.memory_space<vmem>>, %arg3: memref<1x128xf32, #tpu.memory_space<vmem>>, %arg4: memref<128x128xbf16, #tpu.memory_space<vmem>>, %arg5: memref<1x128xf32, #tpu.memory_space<vmem>>, %arg6: memref<128x128xf32, #tpu.memory_space<vmem>>, %arg7: memref<1x128xf32, #tpu.memory_space<vmem>>, %arg8: memref<8x128xf32, #tpu.memory_space<vmem>>) attributes {dimension_semantics = [#tpu.dimension_semantics<parallel>], iteration_bounds = array<i64: 1>, scalar_prefetch = 0 : i64, scratch_operands = 0 : i64, tpu.core_type = #tpu.core_type<tc>, window_params = [{transform_indices = @transform_0, window_bounds = array<i64: 8, 128>}, {pipeline_mode = #tpu.pipeline_mode<synchronous>, transform_indices = @transform_1, window_bounds = array<i64: 128, 128>}, {pipeline_mode = #tpu.pipeline_mode<synchronous>, transform_indices = @transform_2, window_bounds = array<i64: 1, 128>}, {pipeline_mode = #tpu.pipeline_mode<synchronous>, transform_indices = @transform_3, window_bounds = array<i64: 128, 128>}, {pipeline_mode = #tpu.pipeline_mode<synchronous>, transform_indices = @transform_4, window_bounds = array<i64: 1, 128>}, {pipeline_mode = #tpu.pipeline_mode<synchronous>, transform_indices = @transform_5, window_bounds = array<i64: 128, 128>}, {pipeline_mode = #tpu.pipeline_mode<synchronous>, transform_indices = @transform_6, window_bounds = array<i64: 1, 128>}, {transform_indices = @transform_7, window_bounds = array<i64: 8, 128>}]} {
    %c0 = arith.constant 0 : index
    %c0_0 = arith.constant 0 : index
    %0 = vector.load %arg1[%c0, %c0_0] : memref<8x128xf32, #tpu.memory_space<vmem>>, vector<8x128xf32>
    %1 = arith.truncf %0 : vector<8x128xf32> to vector<8x128xbf16>
    %c0_1 = arith.constant 0 : index
    %c0_2 = arith.constant 0 : index
    %2 = vector.load %arg2[%c0_1, %c0_2] : memref<128x128xbf16, #tpu.memory_space<vmem>>, vector<128x128xbf16>
    %cst = arith.constant dense<0.000000e+00> : vector<8x128xf32>
    %3 = tpu.matmul %1, %2, %cst {dimension_numbers = #tpu.dot_dimension_numbers<[1], [0], [0], [1], [0, 0, 1, 1], [], []>} : vector<8x128xbf16>, vector<128x128xbf16>, vector<8x128xf32> -> vector<8x128xf32>
    %c0_3 = arith.constant 0 : index
    %c0_4 = arith.constant 0 : index
    %4 = vector.load %arg3[%c0_3, %c0_4] : memref<1x128xf32, #tpu.memory_space<vmem>>, vector<1x128xf32>
    %5 = vector.broadcast %4 : vector<1x128xf32> to vector<8x128xf32>
    %6 = arith.addf %3, %5 : vector<8x128xf32>
    %cst_5 = arith.constant 0.000000e+00 : f32
    %7 = vector.broadcast %cst_5 : f32 to vector<8x128xf32>
    %8 = arith.maximumf %6, %7 : vector<8x128xf32>
    %9 = arith.truncf %8 : vector<8x128xf32> to vector<8x128xbf16>
    %c0_6 = arith.constant 0 : index
    %c0_7 = arith.constant 0 : index
    %10 = vector.load %arg4[%c0_6, %c0_7] : memref<128x128xbf16, #tpu.memory_space<vmem>>, vector<128x128xbf16>
    %cst_8 = arith.constant dense<0.000000e+00> : vector<8x128xf32>
    %11 = tpu.matmul %9, %10, %cst_8 {dimension_numbers = #tpu.dot_dimension_numbers<[1], [0], [0], [1], [0, 0, 1, 1], [], []>} : vector<8x128xbf16>, vector<128x128xbf16>, vector<8x128xf32> -> vector<8x128xf32>
    %c0_9 = arith.constant 0 : index
    %c0_10 = arith.constant 0 : index
    %12 = vector.load %arg5[%c0_9, %c0_10] : memref<1x128xf32, #tpu.memory_space<vmem>>, vector<1x128xf32>
    %13 = vector.broadcast %12 : vector<1x128xf32> to vector<8x128xf32>
    %14 = arith.addf %11, %13 : vector<8x128xf32>
    %cst_11 = arith.constant 0.000000e+00 : f32
    %15 = vector.broadcast %cst_11 : f32 to vector<8x128xf32>
    %16 = arith.maximumf %14, %15 : vector<8x128xf32>
    %c0_12 = arith.constant 0 : index
    %c0_13 = arith.constant 0 : index
    %17 = vector.load %arg6[%c0_12, %c0_13] : memref<128x128xf32, #tpu.memory_space<vmem>>, vector<128x128xf32>
    %cst_14 = arith.constant dense<0.000000e+00> : vector<8x128xf32>
    %18 = tpu.matmul %16, %17, %cst_14 {dimension_numbers = #tpu.dot_dimension_numbers<[1], [0], [0], [1], [0, 0, 1, 1], [], []>} : vector<8x128xf32>, vector<128x128xf32>, vector<8x128xf32> -> vector<8x128xf32>
    %c0_15 = arith.constant 0 : index
    %c0_16 = arith.constant 0 : index
    %19 = vector.load %arg7[%c0_15, %c0_16] : memref<1x128xf32, #tpu.memory_space<vmem>>, vector<1x128xf32>
    %20 = vector.broadcast %19 : vector<1x128xf32> to vector<8x128xf32>
    %21 = arith.addf %18, %20 : vector<8x128xf32>
    %c0_17 = arith.constant 0 : index
    %c0_18 = arith.constant 0 : index
    %22 = vector.load %arg8[%c0_17, %c0_18] : memref<8x128xf32, #tpu.memory_space<vmem>>, vector<8x128xf32>
    tpu.vector_store %arg8[%c0_17, %c0_18], %21 {strides = array<i32>} : memref<8x128xf32, #tpu.memory_space<vmem>>, vector<8x128xf32>,
    return
  }
  func.func @transform_0(%arg0: i32) -> (i32, i32) {
    %c0_i32 = arith.constant 0 : i32
    %c0_i32_0 = arith.constant 0 : i32
    return %arg0, %c0_i32 : i32, i32
  }
  func.func @transform_1(%arg0: i32) -> (i32, i32) {
    %c0_i32 = arith.constant 0 : i32
    %c0_i32_0 = arith.constant 0 : i32
    %c0_i32_1 = arith.constant 0 : i32
    return %c0_i32, %c0_i32_0 : i32, i32
  }
  func.func @transform_2(%arg0: i32) -> (i32, i32) {
    %c0_i32 = arith.constant 0 : i32
    %c0_i32_0 = arith.constant 0 : i32
    %c0_i32_1 = arith.constant 0 : i32
    return %c0_i32, %c0_i32_0 : i32, i32
  }
  func.func @transform_3(%arg0: i32) -> (i32, i32) {
    %c0_i32 = arith.constant 0 : i32
    %c0_i32_0 = arith.constant 0 : i32
    %c0_i32_1 = arith.constant 0 : i32
    return %c0_i32, %c0_i32_0 : i32, i32
  }
  func.func @transform_4(%arg0: i32) -> (i32, i32) {
    %c0_i32 = arith.constant 0 : i32
    %c0_i32_0 = arith.constant 0 : i32
    %c0_i32_1 = arith.constant 0 : i32
    return %c0_i32, %c0_i32_0 : i32, i32
  }
  func.func @transform_5(%arg0: i32) -> (i32, i32) {
    %c0_i32 = arith.constant 0 : i32
    %c0_i32_0 = arith.constant 0 : i32
    %c0_i32_1 = arith.constant 0 : i32
    return %c0_i32, %c0_i32_0 : i32, i32
  }
  func.func @transform_6(%arg0: i32) -> (i32, i32) {
    %c0_i32 = arith.constant 0 : i32
    %c0_i32_0 = arith.constant 0 : i32
    %c0_i32_1 = arith.constant 0 : i32
    return %c0_i32, %c0_i32_0 : i32, i32
  }
  func.func @transform_7(%arg0: i32) -> (i32, i32) {
    %c0_i32 = arith.constant 0 : i32
    %c0_i32_0 = arith.constant 0 : i32
    return %arg0, %c0_i32 : i32, i32
  }
}

</mosaic_0001>

<bundles_post_ra>
// kernel: mlp_forward.1
= control target key start
LH: loop header
LB: loop body
LE: loop exit
PB: predicated region body
PF: predicated region fallthrough
CT: control target
= control target key end

     0   :  { %12 = vsyncpa [#allocation3], 0  ;;  %s755_s0 = inlined_call_operand.vmem [shape: f32[8,128], index: 0, kind: input, shape index: {}]   ;;  %s756_s1 = inlined_call_operand.hbm [shape: bf16[128,128], index: 1, kind: input, shape index: {}]   ;;  %s757_s2 = inlined_call_operand.vmem [shape: f32[1,128], index: 2, kind: input, shape index: {}]   ;;  %s758_s3 = inlined_call_operand.hbm [shape: bf16[128,128], index: 3, kind: input, shape index: {}]   ;;  %s759_s4 = inlined_call_operand.vmem [shape: f32[1,128], index: 4, kind: input, shape index: {}]   ;;  %s760_s5 = inlined_call_operand.hbm [shape: f32[128,128], index: 5, kind: input, shape index: {}]   ;;  %s761_s6 = inlined_call_operand.vmem [shape: f32[1,128], index: 6, kind: input, shape index: {}]   ;;  %s762_s7 = inlined_call_operand.vmem [shape: f32[8,128], index: 7, kind: output, shape index: {}]  }
   0x1   :  { %13 = vsyncpa [#allocation5], 0  ;;  %s644_s24 = smov [#allocation4]   ;;  %s645_s26 = smov [#allocation2]  }
   0x2   :  { %s35_s25 = sshll.u32 %s644_s24, 4  ;;  %s21_s27 = sshll.u32 %s645_s26, 4  ;;  %s36_s25 = int_to_ptr.vmem [resolvable:$true] %s35_s25  ;;  %s694_s27 = int_to_ptr.vmem [resolvable:$true] %s21_s27 }
   0x3   :  { %s574_s30 = scalar_lea.hbm %s758_s3, 1024 }
   0x4   :  { %p575_p0 = scmp.ne.s32.totalorder %s758_s3, %s574_s30  ;;  %p578_p1 = scmp.lt.u32.totalorder %s574_s30, %s758_s3 }
   0x6   :  { %p580_p2 = pnand %p578_p1, %p575_p0 }
   0x8   :  { %583 = shalt.err (!%p580_p2)
}
   0x9   :  { %s584_s12 = scalar_lea.vmem %s36_s25, 1024  ;;  %p589_p4 = scmp.lt.s32.totalorder %s36_s25, %s36_s25 }
   0xa   :  { %p585_p3 = scmp.ne.s32.totalorder %s36_s25, %s584_s12  ;;  %p590_p5 = scmp.lt.s32.totalorder %s584_s12, %s584_s12 }
   0xc   :  { %p591_p6 = por %p590_p5, %p589_p4 }
   0xe   :  { %p592_p7 = pnand %p591_p6, %p585_p3 }
  0x10   :  { %595 = shalt.err (!%p592_p7)
}
  0x11   :  { %s646_s13 = smov 64   ;;  %s647_s14 = smov 4  }
  0x12   :  { %41 = dma.hbm_to_vmem [thread:$0]  %s758_s3, 1024, %s36_s25, [#allocation5], %s646_s13, %s646_s13, %s647_s14  }
  0x13   :  { %s596_s19 = scalar_lea.hbm %s756_s1, 1024 }
  0x14   :  { %p597_p8 = scmp.ne.s32.totalorder %s756_s1, %s596_s19  ;;  %p600_p9 = scmp.lt.u32.totalorder %s596_s19, %s756_s1 }
  0x16   :  { %p602_p10 = pnand %p600_p9, %p597_p8 }
  0x18   :  { %605 = shalt.err (!%p602_p10)
}
  0x19   :  { %s606_s24 = scalar_lea.vmem %s694_s27, 1024  ;;  %p611_p12 = scmp.lt.s32.totalorder %s694_s27, %s694_s27 }
  0x1a   :  { %p607_p11 = scmp.ne.s32.totalorder %s694_s27, %s606_s24  ;;  %p612_p13 = scmp.lt.s32.totalorder %s606_s24, %s606_s24 }
  0x1c   :  { %p613_p0 = por %p612_p13, %p611_p12 }
  0x1e   :  { %p614_p1 = pnand %p613_p0, %p607_p11 }
  0x20   :  { %617 = shalt.err (!%p614_p1)
}
  0x21   :  { %27 = dma.hbm_to_vmem [thread:$0]  %s756_s1, 1024, %s694_s27, [#allocation3], %s646_s13, %s646_s13, %s647_s14  }
  0x22   :  { %s648_s26 = smov [#allocation6]   ;;  %s618_s8 = scalar_lea.hbm %s760_s5, 2048 }
  0x23   :  { %s49_s28 = sshll.u32 %s648_s26, 4  ;;  %p619_p2 = scmp.ne.s32.totalorder %s760_s5, %s618_s8  ;;  %s50_s28 = int_to_ptr.vmem [resolvable:$true] %s49_s28 }
  0x24   :  { %p622_p3 = scmp.lt.u32.totalorder %s618_s8, %s760_s5 }
  0x26   :  { %p624_p4 = pnand %p622_p3, %p619_p2 }
  0x28   :  { %627 = shalt.err (!%p624_p4)
}
  0x29   :  { %s628_s15 = scalar_lea.vmem %s50_s28, 2048  ;;  %p633_p6 = scmp.lt.s32.totalorder %s50_s28, %s50_s28 }
  0x2a   :  { %p629_p5 = scmp.ne.s32.totalorder %s50_s28, %s628_s15  ;;  %p634_p7 = scmp.lt.s32.totalorder %s628_s15, %s628_s15 }
  0x2c   :  { %p635_p8 = por %p634_p7, %p633_p6 }
  0x2e   :  { %p636_p9 = pnand %p635_p8, %p629_p5 }
  0x30   :  { %639 = shalt.err (!%p636_p9)
}
  0x31   :  { %s649_s1 = smov 128   ;;  %s650_s27 = smov 8  }
  0x32   :  { %55 = dma.hbm_to_vmem [thread:$0]  %s760_s5, 2048, %s50_s28, [#allocation5], %s649_s1, %s649_s1, %s650_s27  }
  0x33   :  { %640 = dma.done.wait [#allocation3], 1024  }
  0x34   :  { %641 = vsyncadd [#allocation3], 4294966272 }
  0x35   :  { %642 = dma.done.wait [#allocation5], 3072  }
  0x36   :  { %643 = vsyncadd [#allocation5], 4294964224  ;;  %v651_v0 = vmov 0.0   ;;  %vm652_vm0 = vmmov 0   ;;  %v558_v1 = vld [vmem:[#allocation2] sm:$0xff]   ;;  %v559_v2 = vld [vmem:[#allocation2 + $0x8] sm:$0xff]  }
  0x37   :  { %449 = vmatprep.subr.bf16.mxu0 %v651_v0  ;;  %465 = vmatprep.mubr.msk.bf16.mxu0 %vm652_vm0, %v651_v0  ;;  %v560_v3 = vld [vmem:[#allocation2 + $0x10] sm:$0xff]   ;;  %v566_v4 = vld [vmem:[#allocation4] sm:$0xff]   ;;  %v561_v5 = vld [vmem:[#allocation2 + $0x18] sm:$0xff]   ;;  %v653_v22 = vmov 0.0|0.0  }
  0x38   :  { %469 = vmatprep.subr.bf16.mxu1 %v651_v0  ;;  %485 = vmatprep.mubr.msk.bf16.mxu1 %vm652_vm0, %v651_v0  ;;  %v567_v6 = vld [vmem:[#allocation4 + $0x8] sm:$0xff]   ;;  %v562_v7 = vld [vmem:[#allocation2 + $0x20] sm:$0xff]   ;;  %v568_v8 = vld [vmem:[#allocation4 + $0x10] sm:$0xff]  }
  0x39   :  { %450 = vmatpush3.bf16.msra.mxu0 %v558_v1  ;;  %470 = vmatpush3.bf16.msra.mxu1 %v566_v4  ;;  %v563_v9 = vld [vmem:[#allocation2 + $0x28] sm:$0xff]   ;;  %v569_v10 = vld [vmem:[#allocation4 + $0x18] sm:$0xff]   ;;  %v564_v11 = vld [vmem:[#allocation2 + $0x30] sm:$0xff]  }
  0x3a   :  { %451 = vmatprep.subr.bf16.mxu0 %v651_v0  ;;  %471 = vmatprep.subr.bf16.mxu1 %v651_v0  ;;  %v570_v12 = vld [vmem:[#allocation4 + $0x20] sm:$0xff]   ;;  %v565_v13 = vld [vmem:[#allocation2 + $0x38] sm:$0xff]   ;;  %v571_v15 = vld [vmem:[#allocation4 + $0x28] sm:$0xff]  }
  0x3b   :  { %v68_v14 = vld [vmem:[%s755_s0] sm:$0xff]  ;;  %v572_v17 = vld [vmem:[#allocation4 + $0x30] sm:$0xff]   ;;  %v573_v18 = vld [vmem:[#allocation4 + $0x38] sm:$0xff]  }
  0x3c   :  { %v69_v16 = vpack.c.bf16 %v68_v14, %v68_v14  ;;  %v295_v19 = vld [vmem:[#allocation6] sm:$0xff]  ;;  %v296_v20 = vld [vmem:[#allocation6 + $0x8] sm:$0xff]  ;;  %v297_v21 = vld [vmem:[#allocation6 + $0x10] sm:$0xff] }
  0x3d   :  { %452 = vmatpush3.bf16.msra.mxu0 %v559_v2  ;;  %472 = vmatpush3.bf16.msra.mxu1 %v567_v6  ;;  %v525_v23 = vpack.c.bf16 %v296_v20, %v295_v19  ;;  %v298_v24 = vld [vmem:[#allocation6 + $0x18] sm:$0xff]  ;;  %v299_v26 = vld [vmem:[#allocation6 + $0x20] sm:$0xff]  ;;  %v300_v27 = vld [vmem:[#allocation6 + $0x28] sm:$0xff] }
  0x3e   :  { %453 = vmatprep.subr.bf16.mxu0 %v651_v0  ;;  %473 = vmatprep.subr.bf16.mxu1 %v651_v0  ;;  %v528_v25 = vpack.c.bf16 %v298_v24, %v297_v21  ;;  %v531_v28 = vpack.c.bf16 %v300_v27, %v299_v26  ;;  %v301_v29 = vld [vmem:[#allocation6 + $0x30] sm:$0xff]  ;;  %v302_v30 = vld [vmem:[#allocation6 + $0x38] sm:$0xff]  ;;  %v303_v32 = vld [vmem:[#allocation6 + $0x40] sm:$0xff] }
  0x3f   :  { %v534_v31 = vpack.c.bf16 %v302_v30, %v301_v29  ;;  %v304_v33 = vld [vmem:[#allocation6 + $0x48] sm:$0xff]  ;;  %v305_v35 = vld [vmem:[#allocation6 + $0x50] sm:$0xff]  ;;  %v306_v36 = vld [vmem:[#allocation6 + $0x58] sm:$0xff] }
  0x40   :  { %v537_v34 = vpack.c.bf16 %v304_v33, %v303_v32  ;;  %v540_v37 = vpack.c.bf16 %v306_v36, %v305_v35  ;;  %v307_v38 = vld [vmem:[#allocation6 + $0x60] sm:$0xff]  ;;  %v308_v39 = vld [vmem:[#allocation6 + $0x68] sm:$0xff]  ;;  %v309_v49 = vld [vmem:[#allocation6 + $0x70] sm:$0xff] }
  0x41   :  { %454 = vmatpush3.bf16.msra.mxu0 %v560_v3  ;;  %474 = vmatpush3.bf16.msra.mxu1 %v568_v8  ;;  %v543_v40 = vpack.c.bf16 %v308_v39, %v307_v38  ;;  %v395_v41 = vld [vmem:[%s757_s2] ss:$0 sm:$0xff]  ;;  %v310_v50 = vld [vmem:[#allocation6 + $0x78] sm:$0xff] }
  0x42   :  { %455 = vmatprep.subr.bf16.mxu0 %v651_v0  ;;  %475 = vmatprep.subr.bf16.mxu1 %v651_v0  ;;  %v546_v51 = vpack.c.bf16 %v310_v50, %v309_v49  ;;  %v404_v52 = vld [vmem:[%s759_s4] ss:$0 sm:$0xff] }
  0x43   :  { %v413_v59 = vld [vmem:[%s761_s6] ss:$0 sm:$0xff] }
  0x45   :  { %456 = vmatpush3.bf16.msra.mxu0 %v561_v5  ;;  %476 = vmatpush3.bf16.msra.mxu1 %v569_v10 }
  0x46   :  { %457 = vmatprep.subr.bf16.mxu0 %v651_v0  ;;  %477 = vmatprep.subr.bf16.mxu1 %v651_v0 }
  0x49   :  { %458 = vmatpush3.bf16.msra.mxu0 %v562_v7  ;;  %478 = vmatpush3.bf16.msra.mxu1 %v570_v12 }
  0x4a   :  { %459 = vmatprep.subr.bf16.mxu0 %v651_v0  ;;  %479 = vmatprep.subr.bf16.mxu1 %v651_v0 }
  0x4d   :  { %460 = vmatpush3.bf16.msra.mxu0 %v563_v9  ;;  %480 = vmatpush3.bf16.msra.mxu1 %v571_v15 }
  0x4e   :  { %461 = vmatprep.subr.bf16.mxu0 %v651_v0  ;;  %481 = vmatprep.subr.bf16.mxu1 %v651_v0 }
  0x51   :  { %462 = vmatpush3.bf16.msra.mxu0 %v564_v11  ;;  %482 = vmatpush3.bf16.msra.mxu1 %v572_v17 }
  0x52   :  { %463 = vmatprep.subr.bf16.mxu0 %v651_v0  ;;  %483 = vmatprep.subr.bf16.mxu1 %v651_v0 }
  0x55   :  { %464 = vmatpush3.bf16.msra.mxu0 %v565_v13  ;;  %484 = vmatpush3.bf16.msra.mxu1 %v573_v18 }
  0x56   :  { %524 = vmatprep.subr.bf16.mxu0 %v653_v22 }
  0x58   :  { %466 = vmatmul.mubr.bf16.vlgmr.msra.gmra.mrb[0].mxu0 %v69_v16 }
  0x59   :  { %521 = vmatprep.mubr.msk.f32.mxu0 %vm652_vm0, %v651_v0  ;;  %526 = vmatpush3.bf16.msra.mxu0 %v525_v23 }
  0x5a   :  { %527 = vmatprep.subr.bf16.mxu0 %v653_v22 }
  0x5d   :  { %529 = vmatpush3.bf16.msra.mxu0 %v528_v25 }
  0x5e   :  { %530 = vmatprep.subr.bf16.mxu0 %v653_v22 }
  0x61   :  { %532 = vmatpush3.bf16.msra.mxu0 %v531_v28 }
  0x62   :  { %533 = vmatprep.subr.bf16.mxu0 %v653_v22 }
  0x65   :  { %535 = vmatpush3.bf16.msra.mxu0 %v534_v31 }
  0x66   :  { %536 = vmatprep.subr.bf16.mxu0 %v653_v22 }
  0x69   :  { %538 = vmatpush3.bf16.msra.mxu0 %v537_v34 }
  0x6a   :  { %539 = vmatprep.subr.bf16.mxu0 %v653_v22 }
  0x6d   :  { %541 = vmatpush3.bf16.msra.mxu0 %v540_v37 }
  0x6e   :  { %542 = vmatprep.subr.bf16.mxu0 %v653_v22 }
  0x71   :  { %544 = vmatpush3.bf16.msra.mxu0 %v543_v40 }
  0x72   :  { %545 = vmatprep.subr.bf16.mxu0 %v653_v22 }
  0x75   :  { %547 = vmatpush3.bf16.msra.mxu0 %v546_v51 }
 0x12b   :  { %v175_v42 = vpop.f32.mrb[0].mxu0 }
 0x12c   :  { %v176_v43 = vadd.f32 %v395_v41, %v175_v42  ;;  %v467_v44 = vpop.f32.mrb[1].mxu0 }
 0x12d   :  { %v178_v45 = vpop.f32.mrb[2].mxu0 }
 0x12e   :  { %v181_v46 = vmax.f32 %v176_v43, 0.0  ;;  %v468_v47 = vpop.f32.mrb[3].mxu0 }
 0x130   :  { %v182_v48 = vpack.c.bf16 %v181_v46, %v181_v46 }
 0x132   :  { %486 = vmatmul.mubr.bf16.vlgmr.msra.gmra.mrb[0].mxu1 %v182_v48 }
 0x205   :  { %v288_v53 = vpop.f32.mrb[0].mxu1 }
 0x206   :  { %v289_v54 = vadd.f32 %v404_v52, %v288_v53  ;;  %v487_v55 = vpop.f32.mrb[1].mxu1 }
 0x207   :  { %v291_v56 = vpop.f32.mrb[2].mxu1 }
 0x208   :  { %v294_v57 = vmax.f32 %v289_v54, 0.0  ;;  %v488_v58 = vpop.f32.mrb[3].mxu1 }
 0x20a   :  { %522 = vmatmul.mubr.f32.vlgmr.msra.gmra.mrb[4].mxu0 %v294_v57 }
 0x2dd   :  { %v384_v60 = vpop.f32.mrb[4].mxu0 }
 0x2de   :  { %v385_v61 = vadd.f32 %v413_v59, %v384_v60  ;;  %v523_v62 = vpop.f32.mrb[5].mxu0 }
 0x2e0   :  { %388 = vst [vmem:[%s762_s7] sm:$0xff] %v385_v61 }
 0x2e1   :  { %393 = vsyncpa [#allocation3], 1 }
 0x2e2   :  { %394 = vsyncpa [#allocation5], 1 }

</bundles_post_ra>
